<compile_context>
chip_gen: v7x
topology: tpu7x:2x2x1
jax: 0.10.0
libtpu: 0.0.40
codegen_flags: <defaults>
</compile_context>

<pallas_src>
import functools
import math

import jax
import jax.numpy as jnp
from jax.experimental import pallas as pl
from jax.experimental.pallas import tpu as pltpu

# Logical sizes of the PyTorch module.
HIDDEN1 = 124
HIDDEN2 = 24

# Lane-padded sizes used inside the kernel (dense 128-lane tiles).
HIDDEN1_PAD = 128
HIDDEN2_PAD = 128
OUT_PAD = 128


def _round_up(x, m):
    return (x + m - 1) // m * m


def _policy_kernel(x_ref, bits_ref, w1_ref, b1_ref, w2_ref, b2_ref, w3_ref,
                   b3_ref, out_ref, *, dropout_p, training, action_space,
                   use_pl_reciprocal):
    x = x_ref[...].astype(jnp.float32)

    # ---- layer1 + ReLU (MXU matmul, f32 accumulate) ----
    h = jnp.dot(x, w1_ref[...], preferred_element_type=jnp.float32) + b1_ref[...]
    h = jnp.maximum(h, 0.0)

    # ---- dropout (PyTorch train-mode semantics) ----
    # bits_ref holds uniform random int32 bit patterns; keep iff bits >= thr,
    # where thr is chosen so P(keep) = 1 - p.  Pure integer compare on the VPU.
    if training and dropout_p > 0.0:
        thr = int(round((float(dropout_p) - 0.5) * 2.0**32))
        thr = max(-(2**31), min(thr, 2**31 - 1))
        keep = bits_ref[...] >= jnp.int32(thr)
        h = jnp.where(keep, h * jnp.float32(1.0 / (1.0 - dropout_p)), 0.0)

    # ---- layer2 + ReLU ----
    h = jnp.dot(h, w2_ref[...], preferred_element_type=jnp.float32) + b2_ref[...]
    h = jnp.maximum(h, 0.0)

    # ---- layer3 (lane-padded logits) ----
    logits = jnp.dot(h, w3_ref[...], preferred_element_type=jnp.float32) + b3_ref[...]

    # Mask padded output lanes to -inf so they contribute nothing to the softmax.
    lane = jax.lax.broadcasted_iota(jnp.int32, logits.shape, 1)
    logits = jnp.where(lane < action_space, logits, -jnp.inf)

    # ---- numerically-stable softmax over the last dim ----
    m = jnp.max(logits, axis=-1, keepdims=True)
    e = jnp.exp(logits - m)
    s = jnp.sum(e, axis=-1, keepdims=True)
    if use_pl_reciprocal:
        out_ref[...] = e * pl.reciprocal(s, approx=False)
    else:
        out_ref[...] = e / s


def policy_forward(x, params, *, action_space, dropout_p, training=True,
                   key=None, batch_block=512):
    """x: (B, state_space) f32.  params: lane-padded (w1, b1, w2, b2, w3, b3)
    in (in, out) layout.  Returns (B, action_space) action probabilities."""
    w1, b1, w2, b2, w3, b3 = params
    batch, state_space = x.shape
    on_tpu = jax.default_backend() == "tpu"

    # Batch tiling: one grid step per batch block; pad batch so it divides evenly.
    b_blk = min(int(batch_block), _round_up(batch, 8))
    b_pad = _round_up(batch, b_blk)
    if b_pad != batch:
        x = jnp.pad(x, ((0, b_pad - batch), (0, 0)))

    # Host-side dropout bits (uniform int32 bit patterns), streamed per block so
    # every batch block gets an independent mask.
    if key is None:
        key = jax.random.PRNGKey(0)
    bits = jax.lax.bitcast_convert_type(
        jax.random.bits(key, (b_pad, HIDDEN1_PAD), dtype=jnp.uint32), jnp.int32)

    kernel = functools.partial(
        _policy_kernel,
        dropout_p=float(dropout_p),
        training=bool(training),
        action_space=int(action_space),
        use_pl_reciprocal=on_tpu,
    )

    block = lambda i: (i, 0)      # streamed per batch block (double-buffered)
    resident = lambda i: (0, 0)   # weights: constant block -> stay VMEM-resident

    extra_kwargs = {}
    if on_tpu:
        extra_kwargs["compiler_params"] = pltpu.CompilerParams(
            dimension_semantics=("parallel",))

    out = pl.pallas_call(
        kernel,
        out_shape=jax.ShapeDtypeStruct((b_pad, OUT_PAD), jnp.float32),
        grid=(b_pad // b_blk,),
        in_specs=[
            pl.BlockSpec((b_blk, state_space), block),          # x
            pl.BlockSpec((b_blk, HIDDEN1_PAD), block),          # dropout bits
            pl.BlockSpec((state_space, HIDDEN1_PAD), resident), # W1
            pl.BlockSpec((1, HIDDEN1_PAD), resident),           # b1
            pl.BlockSpec((HIDDEN1_PAD, HIDDEN2_PAD), resident), # W2
            pl.BlockSpec((1, HIDDEN2_PAD), resident),           # b2
            pl.BlockSpec((HIDDEN2_PAD, OUT_PAD), resident),     # W3
            pl.BlockSpec((1, OUT_PAD), resident),               # b3
        ],
        out_specs=pl.BlockSpec((b_blk, OUT_PAD), block),
        **extra_kwargs,
    )(x, bits, w1, b1, w2, b2, w3, b3)

    return out[:batch, :action_space]


def init_params(key, state_space, action_space):
    """PyTorch nn.Linear-style init (U(-1/sqrt(fan_in), 1/sqrt(fan_in))), stored
    in (in, out) layout and zero-padded to lane-multiple widths so padded
    lanes/rows contribute exactly 0 downstream."""

    def linear(k, fan_in, fan_out, in_pad, out_pad):
        kw, kb = jax.random.split(k)
        bound = 1.0 / math.sqrt(fan_in)
        w = jax.random.uniform(kw, (fan_in, fan_out), jnp.float32, -bound, bound)
        b = jax.random.uniform(kb, (fan_out,), jnp.float32, -bound, bound)
        w_pad = jnp.zeros((in_pad, out_pad), jnp.float32).at[:fan_in, :fan_out].set(w)
        b_pad = jnp.zeros((1, out_pad), jnp.float32).at[0, :fan_out].set(b)
        return w_pad, b_pad

    k1, k2, k3 = jax.random.split(key, 3)
    w1, b1 = linear(k1, state_space, HIDDEN1, state_space, HIDDEN1_PAD)
    w2, b2 = linear(k2, HIDDEN1, HIDDEN2, HIDDEN1_PAD, HIDDEN2_PAD)
    w3, b3 = linear(k3, HIDDEN2, action_space, HIDDEN2_PAD, OUT_PAD)
    return (w1, b1, w2, b2, w3, b3)


def policy_forward_ref(x, params, *, action_space):
    """Pure-JAX reference (eval mode, no dropout)."""
    w1, b1, w2, b2, w3, b3 = params
    h = jnp.maximum(x @ w1 + b1, 0.0)
    h = jnp.maximum(h @ w2 + b2, 0.0)
    logits = (h @ w3 + b3)[:, :action_space]
    return jax.nn.softmax(logits, axis=-1)


if __name__ == "__main__":
    state_space = 4      # CartPole observation dim
    action_space = 2     # CartPole actions
    dropout_p = 0.6
    batch = 8

    root = jax.random.PRNGKey(0)
    k_x, k_params, k_drop = jax.random.split(root, 3)

    x = jax.random.normal(k_x, (batch, state_space), dtype=jnp.float32)
    params = init_params(k_params, state_space, action_space)

    # Train-mode forward (with dropout).
    probs = policy_forward(x, params, action_space=action_space,
                           dropout_p=dropout_p, training=True, key=k_drop)
    probs = jax.block_until_ready(probs)
    assert probs.shape == (batch, action_space)
    assert bool(jnp.all(probs >= 0.0))
    assert bool(jnp.allclose(jnp.sum(probs, axis=-1), 1.0, atol=1e-5)), probs

    # Eval-mode forward (dropout off) checked against a pure-JAX reference.
    probs_eval = policy_forward(x, params, action_space=action_space,
                                dropout_p=dropout_p, training=False, key=k_drop)
    probs_eval = jax.block_until_ready(probs_eval)
    ref = policy_forward_ref(x, params, action_space=action_space)
    # Loose tolerance: XLA's f32 matmul path and the MXU pass may round differently.
    assert bool(jnp.allclose(probs_eval, ref, atol=2e-2)), (probs_eval, ref)
    assert bool(jnp.allclose(jnp.sum(probs_eval, axis=-1), 1.0, atol=1e-5))

    print("KERNEL_OK")
</pallas_src>

<mosaic_0001>
module attributes {stable_mosaic.version = 11 : i64} {
  func.func @_policy_kernel(%arg0: i32, %arg1: memref<8x4xf32, #tpu.memory_space<vmem>>, %arg2: memref<8x128xi32, #tpu.memory_space<vmem>>, %arg3: memref<4x128xf32, #tpu.memory_space<vmem>>, %arg4: memref<1x128xf32, #tpu.memory_space<vmem>>, %arg5: memref<128x128xf32, #tpu.memory_space<vmem>>, %arg6: memref<1x128xf32, #tpu.memory_space<vmem>>, %arg7: memref<128x128xf32, #tpu.memory_space<vmem>>, %arg8: memref<1x128xf32, #tpu.memory_space<vmem>>, %arg9: memref<8x128xf32, #tpu.memory_space<vmem>>) attributes {dimension_semantics = [#tpu.dimension_semantics<arbitrary>], iteration_bounds = array<i64: 1>, scalar_prefetch = 0 : i64, scratch_operands = 0 : i64, tpu.core_type = #tpu.core_type<tc>, window_params = [{transform_indices = @transform_0, window_bounds = array<i64: 8, 4>}, {transform_indices = @transform_1, window_bounds = array<i64: 8, 128>}, {pipeline_mode = #tpu.pipeline_mode<synchronous>, transform_indices = @transform_2, window_bounds = array<i64: 4, 128>}, {pipeline_mode = #tpu.pipeline_mode<synchronous>, transform_indices = @transform_3, window_bounds = array<i64: 1, 128>}, {pipeline_mode = #tpu.pipeline_mode<synchronous>, transform_indices = @transform_4, window_bounds = array<i64: 128, 128>}, {pipeline_mode = #tpu.pipeline_mode<synchronous>, transform_indices = @transform_5, window_bounds = array<i64: 1, 128>}, {pipeline_mode = #tpu.pipeline_mode<synchronous>, transform_indices = @transform_6, window_bounds = array<i64: 128, 128>}, {pipeline_mode = #tpu.pipeline_mode<synchronous>, transform_indices = @transform_7, window_bounds = array<i64: 1, 128>}, {transform_indices = @transform_8, window_bounds = array<i64: 8, 128>}]} {
    %c0 = arith.constant 0 : index
    %c0_0 = arith.constant 0 : index
    %0 = vector.load %arg1[%c0, %c0_0] : memref<8x4xf32, #tpu.memory_space<vmem>>, vector<8x4xf32>
    %c0_1 = arith.constant 0 : index
    %c0_2 = arith.constant 0 : index
    %1 = vector.load %arg3[%c0_1, %c0_2] : memref<4x128xf32, #tpu.memory_space<vmem>>, vector<4x128xf32>
    %cst = arith.constant dense<0.000000e+00> : vector<8x128xf32>
    %2 = tpu.matmul %0, %1, %cst {dimension_numbers = #tpu.dot_dimension_numbers<[1], [0], [0], [1], [0, 0, 1, 1], [], []>} : vector<8x4xf32>, vector<4x128xf32>, vector<8x128xf32> -> vector<8x128xf32>
    %c0_3 = arith.constant 0 : index
    %c0_4 = arith.constant 0 : index
    %3 = vector.load %arg4[%c0_3, %c0_4] : memref<1x128xf32, #tpu.memory_space<vmem>>, vector<1x128xf32>
    %4 = vector.broadcast %3 : vector<1x128xf32> to vector<8x128xf32>
    %5 = arith.addf %2, %4 : vector<8x128xf32>
    %cst_5 = arith.constant 0.000000e+00 : f32
    %6 = vector.broadcast %cst_5 : f32 to vector<8x128xf32>
    %7 = arith.maximumf %5, %6 : vector<8x128xf32>
    %c0_6 = arith.constant 0 : index
    %c0_7 = arith.constant 0 : index
    %8 = vector.load %arg2[%c0_6, %c0_7] : memref<8x128xi32, #tpu.memory_space<vmem>>, vector<8x128xi32>
    %c429496730_i32 = arith.constant 429496730 : i32
    %9 = vector.broadcast %c429496730_i32 : i32 to vector<8x128xi32>
    %10 = arith.cmpi sge, %8, %9 : vector<8x128xi32>
    %cst_8 = arith.constant 2.500000e+00 : f32
    %11 = vector.broadcast %cst_8 : f32 to vector<8x128xf32>
    %12 = arith.mulf %7, %11 : vector<8x128xf32>
    %cst_9 = arith.constant 0.000000e+00 : f32
    %13 = vector.broadcast %cst_9 : f32 to vector<8x128xf32>
    %14 = arith.select %10, %12, %13 : vector<8x128xi1>, vector<8x128xf32>
    %c0_10 = arith.constant 0 : index
    %c0_11 = arith.constant 0 : index
    %15 = vector.load %arg5[%c0_10, %c0_11] : memref<128x128xf32, #tpu.memory_space<vmem>>, vector<128x128xf32>
    %cst_12 = arith.constant dense<0.000000e+00> : vector<8x128xf32>
    %16 = tpu.matmul %14, %15, %cst_12 {dimension_numbers = #tpu.dot_dimension_numbers<[1], [0], [0], [1], [0, 0, 1, 1], [], []>} : vector<8x128xf32>, vector<128x128xf32>, vector<8x128xf32> -> vector<8x128xf32>
    %c0_13 = arith.constant 0 : index
    %c0_14 = arith.constant 0 : index
    %17 = vector.load %arg6[%c0_13, %c0_14] : memref<1x128xf32, #tpu.memory_space<vmem>>, vector<1x128xf32>
    %18 = vector.broadcast %17 : vector<1x128xf32> to vector<8x128xf32>
    %19 = arith.addf %16, %18 : vector<8x128xf32>
    %cst_15 = arith.constant 0.000000e+00 : f32
    %20 = vector.broadcast %cst_15 : f32 to vector<8x128xf32>
    %21 = arith.maximumf %19, %20 : vector<8x128xf32>
    %c0_16 = arith.constant 0 : index
    %c0_17 = arith.constant 0 : index
    %22 = vector.load %arg7[%c0_16, %c0_17] : memref<128x128xf32, #tpu.memory_space<vmem>>, vector<128x128xf32>
    %cst_18 = arith.constant dense<0.000000e+00> : vector<8x128xf32>
    %23 = tpu.matmul %21, %22, %cst_18 {dimension_numbers = #tpu.dot_dimension_numbers<[1], [0], [0], [1], [0, 0, 1, 1], [], []>} : vector<8x128xf32>, vector<128x128xf32>, vector<8x128xf32> -> vector<8x128xf32>
    %c0_19 = arith.constant 0 : index
    %c0_20 = arith.constant 0 : index
    %24 = vector.load %arg8[%c0_19, %c0_20] : memref<1x128xf32, #tpu.memory_space<vmem>>, vector<1x128xf32>
    %25 = vector.broadcast %24 : vector<1x128xf32> to vector<8x128xf32>
    %26 = arith.addf %23, %25 : vector<8x128xf32>
    %27 = tpu.iota {dimensions = array<i32: 1>} : vector<8x128xi32>
    %c2_i32 = arith.constant 2 : i32
    %28 = vector.broadcast %c2_i32 : i32 to vector<8x128xi32>
    %29 = arith.cmpi slt, %27, %28 : vector<8x128xi32>
    %cst_21 = arith.constant 0xFF800000 : f32
    %30 = vector.broadcast %cst_21 : f32 to vector<8x128xf32>
    %31 = arith.select %29, %26, %30 : vector<8x128xi1>, vector<8x128xf32>
    %cst_22 = arith.constant dense<0xFF800000> : vector<8xf32>
    %32 = vector.multi_reduction <maximumf>, %31, %cst_22 [1] : vector<8x128xf32> to vector<8xf32>
    %33 = vector.shape_cast %32 : vector<8xf32> to vector<8x1xf32>
    %34 = vector.broadcast %33 : vector<8x1xf32> to vector<8x128xf32>
    %35 = arith.subf %31, %34 : vector<8x128xf32>
    %36 = math.exp %35 : vector<8x128xf32>
    %cst_23 = arith.constant dense<0.000000e+00> : vector<8xf32>
    %37 = vector.multi_reduction <add>, %36, %cst_23 [1] : vector<8x128xf32> to vector<8xf32>
    %38 = vector.shape_cast %37 : vector<8xf32> to vector<8x1xf32>
    %39 = vector.broadcast %38 : vector<8x1xf32> to vector<8x128xf32>
    %40 = arith.divf %36, %39 : vector<8x128xf32>
    %c0_24 = arith.constant 0 : index
    %c0_25 = arith.constant 0 : index
    %41 = vector.load %arg9[%c0_24, %c0_25] : memref<8x128xf32, #tpu.memory_space<vmem>>, vector<8x128xf32>
    tpu.vector_store %arg9[%c0_24, %c0_25], %40 {strides = array<i32>} : memref<8x128xf32, #tpu.memory_space<vmem>>, vector<8x128xf32>,
    return
  }
  func.func @transform_0(%arg0: i32) -> (i32, i32) {
    %c0_i32 = arith.constant 0 : i32
    %c0_i32_0 = arith.constant 0 : i32
    return %arg0, %c0_i32 : i32, i32
  }
  func.func @transform_1(%arg0: i32) -> (i32, i32) {
    %c0_i32 = arith.constant 0 : i32
    %c0_i32_0 = arith.constant 0 : i32
    return %arg0, %c0_i32 : i32, i32
  }
  func.func @transform_2(%arg0: i32) -> (i32, i32) {
    %c0_i32 = arith.constant 0 : i32
    %c0_i32_0 = arith.constant 0 : i32
    %c0_i32_1 = arith.constant 0 : i32
    return %c0_i32, %c0_i32_0 : i32, i32
  }
  func.func @transform_3(%arg0: i32) -> (i32, i32) {
    %c0_i32 = arith.constant 0 : i32
    %c0_i32_0 = arith.constant 0 : i32
    %c0_i32_1 = arith.constant 0 : i32
    return %c0_i32, %c0_i32_0 : i32, i32
  }
  func.func @transform_4(%arg0: i32) -> (i32, i32) {
    %c0_i32 = arith.constant 0 : i32
    %c0_i32_0 = arith.constant 0 : i32
    %c0_i32_1 = arith.constant 0 : i32
    return %c0_i32, %c0_i32_0 : i32, i32
  }
  func.func @transform_5(%arg0: i32) -> (i32, i32) {
    %c0_i32 = arith.constant 0 : i32
    %c0_i32_0 = arith.constant 0 : i32
    %c0_i32_1 = arith.constant 0 : i32
    return %c0_i32, %c0_i32_0 : i32, i32
  }
  func.func @transform_6(%arg0: i32) -> (i32, i32) {
    %c0_i32 = arith.constant 0 : i32
    %c0_i32_0 = arith.constant 0 : i32
    %c0_i32_1 = arith.constant 0 : i32
    return %c0_i32, %c0_i32_0 : i32, i32
  }
  func.func @transform_7(%arg0: i32) -> (i32, i32) {
    %c0_i32 = arith.constant 0 : i32
    %c0_i32_0 = arith.constant 0 : i32
    %c0_i32_1 = arith.constant 0 : i32
    return %c0_i32, %c0_i32_0 : i32, i32
  }
  func.func @transform_8(%arg0: i32) -> (i32, i32) {
    %c0_i32 = arith.constant 0 : i32
    %c0_i32_0 = arith.constant 0 : i32
    return %arg0, %c0_i32 : i32, i32
  }
}

</mosaic_0001>

<bundles_post_ra>
// kernel: tpu_custom_call.1
= control target key start
LH: loop header
LB: loop body
LE: loop exit
PB: predicated region body
PF: predicated region fallthrough
CT: control target
= control target key end

     0   :  { %13 = vsyncpa [#allocation3], 0  ;;  %s742_s0 = inlined_call_operand.vmem [shape: f32[8,4], index: 0, kind: input, shape index: {}]   ;;  %s743_s1 = inlined_call_operand.vmem [shape: s32[8,128], index: 1, kind: input, shape index: {}]   ;;  %s744_s2 = inlined_call_operand.vmem [shape: f32[4,128], index: 2, kind: input, shape index: {}]   ;;  %s745_s3 = inlined_call_operand.vmem [shape: f32[1,128], index: 3, kind: input, shape index: {}]   ;;  %s746_s4 = inlined_call_operand.hbm [shape: f32[128,128], index: 4, kind: input, shape index: {}]   ;;  %s747_s5 = inlined_call_operand.vmem [shape: f32[1,128], index: 5, kind: input, shape index: {}]   ;;  %s748_s6 = inlined_call_operand.hbm [shape: f32[128,128], index: 6, kind: input, shape index: {}]   ;;  %s749_s7 = inlined_call_operand.vmem [shape: f32[1,128], index: 7, kind: input, shape index: {}]   ;;  %s750_s8 = inlined_call_operand.hbm [shape: f32[8,128], index: 8, kind: output, shape index: {}]  }
   0x1   :  { %14 = vsyncpa [#allocation6], 0 }
   0x2   :  { %15 = vsyncpa [#allocation4], 0  ;;  %s616_s27 = smov [#allocation2]   ;;  %s544_s9 = scalar_lea.hbm %s746_s4, 2048 }
   0x3   :  { %s29_s28 = sshll.u32 %s616_s27, 4  ;;  %p545_p0 = scmp.ne.s32.totalorder %s746_s4, %s544_s9  ;;  %s30_s28 = int_to_ptr.vmem [resolvable:$true] %s29_s28 }
   0x4   :  { %p548_p1 = scmp.lt.u32.totalorder %s544_s9, %s746_s4 }
   0x6   :  { %p550_p2 = pnand %p548_p1, %p545_p0 }
   0x8   :  { %553 = shalt.err (!%p550_p2)
}
   0x9   :  { %s554_s14 = scalar_lea.vmem %s30_s28, 2048  ;;  %p559_p4 = scmp.lt.s32.totalorder %s30_s28, %s30_s28 }
   0xa   :  { %p555_p3 = scmp.ne.s32.totalorder %s30_s28, %s554_s14  ;;  %p560_p5 = scmp.lt.s32.totalorder %s554_s14, %s554_s14 }
   0xc   :  { %p561_p6 = por %p560_p5, %p559_p4 }
   0xe   :  { %p562_p7 = pnand %p561_p6, %p555_p3 }
  0x10   :  { %565 = shalt.err (!%p562_p7)
}
  0x11   :  { %s617_s15 = smov 128   ;;  %s618_s16 = smov 8  }
  0x12   :  { %35 = dma.hbm_to_vmem [thread:$0]  %s746_s4, 2048, %s30_s28, [#allocation3], %s617_s15, %s617_s15, %s618_s16  }
  0x13   :  { %s619_s19 = smov [#allocation5]   ;;  %s566_s23 = scalar_lea.hbm %s748_s6, 2048 }
  0x14   :  { %s43_s20 = sshll.u32 %s619_s19, 4  ;;  %p567_p8 = scmp.ne.s32.totalorder %s748_s6, %s566_s23  ;;  %s44_s20 = int_to_ptr.vmem [resolvable:$true] %s43_s20 }
  0x15   :  { %p570_p9 = scmp.lt.u32.totalorder %s566_s23, %s748_s6 }
  0x17   :  { %p572_p10 = pnand %p570_p9, %p567_p8 }
  0x19   :  { %575 = shalt.err (!%p572_p10)
}
  0x1a   :  { %s576_s29 = scalar_lea.vmem %s44_s20, 2048  ;;  %p581_p12 = scmp.lt.s32.totalorder %s44_s20, %s44_s20 }
  0x1b   :  { %p577_p11 = scmp.ne.s32.totalorder %s44_s20, %s576_s29  ;;  %p582_p13 = scmp.lt.s32.totalorder %s576_s29, %s576_s29 }
  0x1d   :  { %p583_p0 = por %p582_p13, %p581_p12 }
  0x1f   :  { %p584_p1 = pnand %p583_p0, %p577_p11 }
  0x21   :  { %587 = shalt.err (!%p584_p1)
}
  0x22   :  { %49 = dma.hbm_to_vmem [thread:$0]  %s748_s6, 2048, %s44_s20, [#allocation6], %s617_s15, %s617_s15, %s618_s16  }
  0x23   :  { %610 = dma.done.wait [#allocation3], 2048  }
  0x24   :  { %611 = vsyncadd [#allocation3], 4294965248 }
  0x25   :  { %612 = dma.done.wait [#allocation6], 2048  }
  0x26   :  { %613 = vsyncadd [#allocation6], 4294965248  ;;  %v620_v0 = vmov 0.0   ;;  %vm621_vm0 = vmmov 0   ;;  %v622_v1 = vmov 0.0|0.0   ;;  %vm71_vm1 = vcmask 1043456  }
  0x27   :  { %409 = vmatprep.subr.mxu0 %v620_v0  ;;  %411 = vmatprep.mubr.msk.f32.mxu0 %vm621_vm0, %v620_v0  ;;  %vm67_vm2 = vcmask 31744   ;;  %v59_v2 = vld [vmem:[%s744_s2] sm:$0xf]  ;;  %v150_v4 = vld [vmem:[#allocation2] sm:$0xff]  ;;  %v151_v5 = vld [vmem:[#allocation2 + $0x8] sm:$0xff] }
  0x28   :  { %484 = vmatprep.subr.bf16.mxu1 %v622_v1  ;;  %446 = vmatprep.mubr.msk.f32.mxu1 %vm621_vm0, %v620_v0  ;;  %v58_v3 = vld [vmem:[%s742_s0] sm:$0xff]  ;;  %v152_v6 = vld [vmem:[#allocation2 + $0x10] sm:$0xff]  ;;  %v485_v8 = vpack.c.bf16 %v151_v5, %v150_v4  ;;  %v154_v10 = vld [vmem:[#allocation2 + $0x20] sm:$0xff] }
  0x29   :  { %410 = vmatpush3.msk.msra.mxu0 %vm71_vm1, %v59_v2  ;;  %v153_v7 = vld [vmem:[#allocation2 + $0x18] sm:$0xff]  ;;  %v155_v11 = vld [vmem:[#allocation2 + $0x28] sm:$0xff]  ;;  %v156_v13 = vld [vmem:[#allocation2 + $0x30] sm:$0xff] }
  0x2a   :  { %412 = vmatmul.mubr.msk.f32.vlgmr.msra.gmra.mrb[0].mxu0 %vm67_vm2, %v58_v3  ;;  %508 = vmatprep.subr.bf16.mxu0 %v622_v1  ;;  %v488_v9 = vpack.c.bf16 %v153_v7, %v152_v6  ;;  %v491_v12 = vpack.c.bf16 %v155_v11, %v154_v10  ;;  %v157_v14 = vld [vmem:[#allocation2 + $0x38] sm:$0xff]  ;;  %v158_v16 = vld [vmem:[#allocation2 + $0x40] sm:$0xff]  ;;  %v159_v17 = vld [vmem:[#allocation2 + $0x48] sm:$0xff] }
  0x2b   :  { %481 = vmatprep.mubr.msk.f32.mxu0 %vm621_vm0, %v620_v0  ;;  %486 = vmatpush3.bf16.msra.mxu1 %v485_v8  ;;  %v494_v15 = vpack.c.bf16 %v157_v14, %v156_v13  ;;  %v497_v18 = vpack.c.bf16 %v159_v17, %v158_v16  ;;  %v160_v19 = vld [vmem:[#allocation2 + $0x50] sm:$0xff]  ;;  %v161_v20 = vld [vmem:[#allocation2 + $0x58] sm:$0xff]  ;;  %v162_v22 = vld [vmem:[#allocation2 + $0x60] sm:$0xff]  ;;  %v337_v0 = vlaneseq }
  0x2c   :  { %487 = vmatprep.subr.bf16.mxu1 %v622_v1  ;;  %v500_v21 = vpack.c.bf16 %v161_v20, %v160_v19  ;;  %v163_v23 = vld [vmem:[#allocation2 + $0x68] sm:$0xff]  ;;  %v164_v25 = vld [vmem:[#allocation2 + $0x70] sm:$0xff]  ;;  %v165_v26 = vld [vmem:[#allocation2 + $0x78] sm:$0xff] }
  0x2d   :  { %v503_v24 = vpack.c.bf16 %v163_v23, %v162_v22  ;;  %v506_v27 = vpack.c.bf16 %v165_v26, %v164_v25  ;;  %v244_v28 = vld [vmem:[#allocation5] sm:$0xff]  ;;  %v245_v29 = vld [vmem:[#allocation5 + $0x8] sm:$0xff]  ;;  %v246_v30 = vld [vmem:[#allocation5 + $0x10] sm:$0xff] }
  0x2e   :  { %v509_v31 = vpack.c.bf16 %v245_v29, %v244_v28  ;;  %v247_v32 = vld [vmem:[#allocation5 + $0x18] sm:$0xff]  ;;  %v248_v34 = vld [vmem:[#allocation5 + $0x20] sm:$0xff]  ;;  %v249_v35 = vld [vmem:[#allocation5 + $0x28] sm:$0xff] }
  0x2f   :  { %489 = vmatpush3.bf16.msra.mxu1 %v488_v9  ;;  %v512_v33 = vpack.c.bf16 %v247_v32, %v246_v30  ;;  %v515_v36 = vpack.c.bf16 %v249_v35, %v248_v34  ;;  %v250_v37 = vld [vmem:[#allocation5 + $0x30] sm:$0xff]  ;;  %v251_v38 = vld [vmem:[#allocation5 + $0x38] sm:$0xff]  ;;  %v252_v40 = vld [vmem:[#allocation5 + $0x40] sm:$0xff] }
  0x30   :  { %490 = vmatprep.subr.bf16.mxu1 %v622_v1  ;;  %510 = vmatpush3.bf16.msra.mxu0 %v509_v31  ;;  %v518_v39 = vpack.c.bf16 %v251_v38, %v250_v37  ;;  %v253_v41 = vld [vmem:[#allocation5 + $0x48] sm:$0xff]  ;;  %v254_v43 = vld [vmem:[#allocation5 + $0x50] sm:$0xff]  ;;  %v255_v44 = vld [vmem:[#allocation5 + $0x58] sm:$0xff] }
  0x31   :  { %511 = vmatprep.subr.bf16.mxu0 %v622_v1  ;;  %v521_v42 = vpack.c.bf16 %v253_v41, %v252_v40  ;;  %v524_v45 = vpack.c.bf16 %v255_v44, %v254_v43  ;;  %v256_v46 = vld [vmem:[#allocation5 + $0x60] sm:$0xff]  ;;  %v257_v47 = vld [vmem:[#allocation5 + $0x68] sm:$0xff]  ;;  %v367_v49 = vld [vmem:[%s745_s3] ss:$0 sm:$0xff] }
  0x32   :  { %v527_v48 = vpack.c.bf16 %v257_v47, %v256_v46  ;;  %v146_v53 = vld [vmem:[%s743_s1] sm:$0xff]  ;;  %v258_v56 = vld [vmem:[#allocation5 + $0x70] sm:$0xff] }
  0x33   :  { %492 = vmatpush3.bf16.msra.mxu1 %v491_v12  ;;  %vm147_vm3 = vcmp.ge.s32.totalorder %v146_v53, 429496730  ;;  %v259_v57 = vld [vmem:[#allocation5 + $0x78] sm:$0xff] }
  0x34   :  { %493 = vmatprep.subr.bf16.mxu1 %v622_v1  ;;  %513 = vmatpush3.bf16.msra.mxu0 %v512_v33  ;;  %v530_v58 = vpack.c.bf16 %v259_v57, %v258_v56  ;;  %v370_v59 = vld [vmem:[%s747_s5] ss:$0 sm:$0xff]  ;;  %s623_s5 = smov [#allocation7]  }
  0x35   :  { %514 = vmatprep.subr.bf16.mxu0 %v622_v1  ;;  %v372_v2 = vld [vmem:[%s749_s7] ss:$0 sm:$0xff]  ;;  %s357_s15 = sshll.u32 %s623_s5, 4  ;;  %s358_s15 = int_to_ptr.vmem [resolvable:$true] %s357_s15 }
  0x36   :  { %s588_s7 = scalar_lea.vmem %s358_s15, 128  ;;  %p593_p3 = scmp.lt.s32.totalorder %s358_s15, %s358_s15 }
  0x37   :  { %495 = vmatpush3.bf16.msra.mxu1 %v494_v15  ;;  %p589_p2 = scmp.ne.s32.totalorder %s358_s15, %s588_s7  ;;  %p594_p4 = scmp.lt.s32.totalorder %s588_s7, %s588_s7 }
  0x38   :  { %496 = vmatprep.subr.bf16.mxu1 %v622_v1  ;;  %516 = vmatpush3.bf16.msra.mxu0 %v515_v36 }
  0x39   :  { %517 = vmatprep.subr.bf16.mxu0 %v622_v1  ;;  %p595_p5 = por %p594_p4, %p593_p3 }
  0x3b   :  { %498 = vmatpush3.bf16.msra.mxu1 %v497_v18  ;;  %p596_p6 = pnand %p595_p5, %p589_p2 }
  0x3c   :  { %499 = vmatprep.subr.bf16.mxu1 %v622_v1  ;;  %519 = vmatpush3.bf16.msra.mxu0 %v518_v39 }
  0x3d   :  { %520 = vmatprep.subr.bf16.mxu0 %v622_v1 }
  0x3f   :  { %501 = vmatpush3.bf16.msra.mxu1 %v500_v21 }
  0x40   :  { %502 = vmatprep.subr.bf16.mxu1 %v622_v1  ;;  %522 = vmatpush3.bf16.msra.mxu0 %v521_v42 }
  0x41   :  { %523 = vmatprep.subr.bf16.mxu0 %v622_v1 }
  0x43   :  { %504 = vmatpush3.bf16.msra.mxu1 %v503_v24 }
  0x44   :  { %505 = vmatprep.subr.bf16.mxu1 %v622_v1  ;;  %525 = vmatpush3.bf16.msra.mxu0 %v524_v45 }
  0x45   :  { %526 = vmatprep.subr.bf16.mxu0 %v622_v1 }
  0x47   :  { %507 = vmatpush3.bf16.msra.mxu1 %v506_v27 }
  0x48   :  { %528 = vmatpush3.bf16.msra.mxu0 %v527_v48 }
  0x49   :  { %529 = vmatprep.subr.bf16.mxu0 %v622_v1  ;;  %v338_v1 = vand.u32 127, %v337_v0 }
  0x4b   :  { %vm339_vm4 = vcmp.lt.s32.totalorder %v338_v1, 2 }
  0x4c   :  { %531 = vmatpush3.bf16.msra.mxu0 %v530_v58 }
  0xfd   :  { %v141_v50 = vpop.f32.mrb[0].mxu0 }
  0xfe   :  { %v142_v51 = vadd.f32 %v367_v49, %v141_v50  ;;  %v413_v52 = vpop.f32.mrb[1].mxu0 }
 0x100   :  { %v145_v54 = vmax.f32 %v142_v51, 0.0 }
 0x102   :  { %v148_v55 = vmul.f32 2.5, %v145_v54 }
 0x104   :  { %447 = vmatmul.mubr.msk.f32.vlgmr.msra.gmra.mrb[0].mxu1 %vm147_vm3, %v148_v55 }
 0x1d7   :  { %v239_v60 = vpop.f32.mrb[0].mxu1 }
 0x1d8   :  { %v240_v61 = vadd.f32 %v370_v59, %v239_v60  ;;  %v448_v62 = vpop.f32.mrb[1].mxu1 }
 0x1da   :  { %v243_v63 = vmax.f32 %v240_v61, 0.0 }
 0x1dc   :  { %482 = vmatmul.mubr.f32.vlgmr.msra.gmra.mrb[2].mxu0 %v243_v63 }
 0x2af   :  { %v333_v3 = vpop.f32.mrb[2].mxu0 }
 0x2b0   :  { %v334_v4 = vadd.f32 %v372_v2, %v333_v3  ;;  %v483_v5 = vpop.f32.mrb[3].mxu0 }
 0x2b2   :  { %v340_v6 = vsel %vm339_vm4, %v334_v4, -inf }
 0x2b3   :  { %341 = vmax.xlane.f32.xlu0 %v340_v6 }
 0x340   :  { %v342_v7 = vpop.xlane.xlu0 %341 }
 0x341   :  { %v343_v8 = vsub.f32 %v340_v6, %v342_v7 }
 0x343   :  { %v344_v9 = vmul.f32 1.442695, %v343_v8 }
 0x345   :  { %540 = vpow2.f32 %v344_v9 }
 0x34f   :  { %v541_v10 = vpop.eup %540 }
 0x350   :  { %346 = vadd.xlane.f32.xlu0 %v541_v10 }
 0x3dd   :  { %v347_v11 = vpop.xlane.xlu0 %346 }
 0x3de   :  { %542 = vrcp.f32 %v347_v11 }
 0x3e8   :  { %v543_v12 = vpop.eup %542 }
 0x3e9   :  { %v349_v13 = vmul.f32 %v543_v12, %v541_v10 }
 0x3eb   :  { %350 = vst [vmem:[#allocation7] sm:$0xff] %v349_v13 }
 0x3ec   :  { %599 = shalt.err (!%p596_p6)
}
 0x3ed   :  { %s600_s18 = scalar_lea.hbm %s750_s8, 128 }
 0x3ee   :  { %p601_p7 = scmp.ne.s32.totalorder %s750_s8, %s600_s18  ;;  %p604_p8 = scmp.lt.u32.totalorder %s600_s18, %s750_s8 }
 0x3f0   :  { %p606_p9 = pnand %p604_p8, %p601_p7 }
 0x3f2   :  { %609 = shalt.err (!%p606_p9)
}
 0x3f3   :  { %360 = dma.vmem_to_hbm [thread:$0]  %s358_s15, 128, %s750_s8, [#allocation4]  }
 0x3f4   :  { %614 = dma.done.wait [#allocation4], 128  }
 0x3f5   :  { %615 = vsyncadd [#allocation4], 4294967168 }
 0x3f6   :  { %364 = vsyncpa [#allocation3], 1 }
 0x3f7   :  { %365 = vsyncpa [#allocation6], 1 }
 0x3f8   :  { %366 = vsyncpa [#allocation4], 1 }

</bundles_post_ra>
